<compile_context>
chip_gen: v7x
topology: tpu7x:2x2x1
jax: 0.10.0
libtpu: 0.0.40
codegen_flags: <defaults>
</compile_context>

<pallas_src>
import numpy as np

import jax
import jax.numpy as jnp
from jax import lax
from jax.experimental import pallas as pl
from jax.experimental.pallas import tpu as pltpu  # noqa: F401  (TPU backend)


# ----------------------------------------------------------------------------
# Fused forward kernel: conv1 + ReLU + conv2 + ReLU + FC, single invocation
# ----------------------------------------------------------------------------
def _fused_expert_kernel(p_ref, w1_ref, w2_ref, b2_ref, wf_ref, bf_ref, o_ref):
    f32, bf16 = jnp.float32, jnp.bfloat16

    # ---- conv1 (+ bias folded into the validity/ones column): ONE MXU matmul.
    # p rows are ordered (conv2-tap k2, conv2-spatial s, sample n); rows whose
    # source position falls in conv2's zero padding are all-zero (including the
    # ones column), so they come out exactly 0 after the matmul + ReLU.
    h1 = jnp.dot(p_ref[...], w1_ref[...], preferred_element_type=f32)
    h1 = jnp.maximum(h1, 0.0).astype(bf16)                       # (9*R2, c1)

    # ---- conv2: tap k2 is the contiguous, 32-row-aligned block of h1; compact
    # per-tap weights (K = c1 = 16, no padding to 128).
    n_tap, _, c2 = w2_ref.shape
    r2 = p_ref.shape[0] // n_tap
    acc2 = jnp.zeros((r2, c2), f32)
    for k in range(n_tap):
        acc2 = acc2 + jnp.dot(h1[r2 * k: r2 * (k + 1), :], w2_ref[k],
                              preferred_element_type=f32)
    h2 = jnp.maximum(acc2 + b2_ref[...], 0.0).astype(bf16)       # (R2, c2) rows=(s, n)

    # ---- FC over PyTorch flatten(C,H,W): weights pre-permuted to (s, c2, cls).
    # TODO(synk): could be ONE (batch, s*c2)x(s*c2, cls) matmul after a
    # rows->lanes relayout of h2; kept as 16 tiny matmuls for lowering safety.
    n_s = wf_ref.shape[0]
    batch = o_ref.shape[0]
    acc3 = jnp.zeros((batch, wf_ref.shape[2]), f32)
    for s in range(n_s):
        acc3 = acc3 + jnp.dot(h2[batch * s: batch * (s + 1), :], wf_ref[s],
                              preferred_element_type=f32)
    o_ref[...] = acc3 + bf_ref[...]                              # (batch, nc_pad) f32


def _fused_forward(patches, w1, w2, b2, wf, bf, *, batch):
    n_tap, c1, c2 = w2.shape
    r2 = patches.shape[0] // n_tap
    flops = 2 * (patches.shape[0] * patches.shape[1] * w1.shape[1]
                 + n_tap * r2 * c1 * c2
                 + wf.shape[0] * batch * wf.shape[1] * wf.shape[2])
    inputs = (patches, w1, w2, b2, wf, bf)
    bytes_accessed = sum(int(np.prod(a.shape)) * a.dtype.itemsize for a in inputs) \
        + batch * wf.shape[2] * 4
    # grid=() single invocation; full arrays resident in VMEM (no double-buffer).
    return pl.pallas_call(
        _fused_expert_kernel,
        out_shape=jax.ShapeDtypeStruct((batch, wf.shape[2]), jnp.float32),
        cost_estimate=pl.CostEstimate(flops=int(flops), transcendentals=0,
                                      bytes_accessed=int(bytes_accessed)),
    )(*inputs)


# ----------------------------------------------------------------------------
# Expert wrapper: init-time constant packing + per-call im2col glue
# ----------------------------------------------------------------------------
class ExpertPallas:
    """Pallas-TPU Expert.forward: logits = D(x) (CNN classifier)."""

    def __init__(self, key, in_ch=4, num_classes=10, h=16, w=16, batch=2,
                 c1=16, c2=32):
        assert h % 4 == 0 and w % 4 == 0
        self.in_ch, self.num_classes = in_ch, num_classes
        self.h, self.w, self.batch = h, w, batch
        self.c1, self.c2 = c1, c2
        oh1, ow1 = h // 2, w // 2
        oh2, ow2 = h // 4, w // 4
        self.oh1, self.ow1, self.oh2, self.ow2 = oh1, ow1, oh2, ow2
        feat = c2 * oh2 * ow2

        kk1, kk2, kk3, kk4, kk5, kk6 = jax.random.split(key, 6)
        # raw PyTorch-layout parameters (f32, deterministic)
        self.w1 = jax.random.normal(kk1, (c1, in_ch, 3, 3), jnp.float32) * 0.05
        self.b1 = jax.random.normal(kk2, (c1,), jnp.float32) * 0.05
        self.w2 = jax.random.normal(kk3, (c2, c1, 3, 3), jnp.float32) * 0.05
        self.b2 = jax.random.normal(kk4, (c2,), jnp.float32) * 0.05
        self.wf = jax.random.normal(kk5, (num_classes, feat), jnp.float32) * 0.05
        self.bf = jax.random.normal(kk6, (num_classes,), jnp.float32) * 0.05

        bf16 = jnp.bfloat16

        # ---------- compact kernel-layout constants (built once) ----------
        k1dim = 9 * in_ch                                   # conv1 contraction
        self.k1pad = int(np.ceil((k1dim + 1) / 64.0) * 64)  # +1 ones/bias column
        w1p = jnp.transpose(self.w1, (2, 3, 1, 0)).reshape(k1dim, c1)
        w1aug = jnp.concatenate([w1p, self.b1[None, :]], axis=0)      # bias row
        self.w1k = jnp.pad(w1aug,
                           ((0, self.k1pad - (k1dim + 1)), (0, 0))).astype(bf16)

        # conv2 per-tap weights, compact K=c1: W2k[k][c1, c2] = w2[c2, c1, ky, kx]
        self.w2k = jnp.transpose(self.w2, (2, 3, 1, 0)).reshape(9, c1, c2).astype(bf16)
        self.b2k = self.b2.reshape(1, c2)                              # f32

        # FC weight pre-permuted per spatial position: Wfk[s][c, j] = wf[j, c*n_s + s]
        n_s = oh2 * ow2
        self.nc_pad = int(np.ceil(num_classes / 16.0) * 16)
        wfp = jnp.transpose(self.wf.reshape(num_classes, c2, n_s), (2, 1, 0))
        self.wfk = jnp.pad(wfp, ((0, 0), (0, 0),
                                 (0, self.nc_pad - num_classes))).astype(bf16)
        self.bfk = jnp.pad(self.bf, (0, self.nc_pad - num_classes)
                           ).reshape(1, self.nc_pad)                   # f32

        # validity flag per duplicated patch row (tap2, oy2, ox2, n): 1 iff the
        # conv1 output position read by that conv2 tap is inside the h1 grid.
        valid = np.zeros((3, 3, oh2, ow2), np.float32)
        for ky in range(3):
            for kx in range(3):
                for oy in range(oh2):
                    for ox in range(ow2):
                        y1, x1 = 2 * oy + ky - 1, 2 * ox + kx - 1
                        if 0 <= y1 < oh1 and 0 <= x1 < ow1:
                            valid[ky, kx, oy, ox] = 1.0
        valid = np.repeat(valid.reshape(-1), batch).reshape(-1, 1)     # rows (k2,s,n)
        self.valid_col = jnp.asarray(valid, jnp.float32)

        self._forward = jax.jit(self._forward_impl)

    def _forward_impl(self, x_nchw):
        n, cin = self.batch, self.in_ch
        oh1, ow1, oh2, ow2 = self.oh1, self.ow1, self.oh2, self.ow2

        # --- tiny XLA-side glue: two-level im2col laid out in the kernel's
        #     duplicated-row order (tap2, s2, n); all static, small shapes. ---
        xp = jnp.pad(jnp.transpose(x_nchw, (0, 2, 3, 1)),
                     ((0, 0), (1, 1), (1, 1), (0, 0)))                 # NHWC, pad 1
        taps1 = [xp[:, ky:ky + 2 * oh1:2, kx:kx + 2 * ow1:2, :]
                 for ky in range(3) for kx in range(3)]
        p1 = jnp.stack(taps1, axis=3).reshape(n, oh1, ow1, 9 * cin)    # conv1 patches
        p1 = jnp.pad(p1, ((0, 0), (1, 1), (1, 1), (0, 0)))             # conv2 zero-pad
        taps2 = [p1[:, ky:ky + 2 * oh2:2, kx:kx + 2 * ow2:2, :]
                 for ky in range(3) for kx in range(3)]
        d = jnp.stack(taps2, axis=0)                                   # (9,n,oh2,ow2,K)
        d = jnp.transpose(d, (0, 2, 3, 1, 4)).reshape(9 * oh2 * ow2 * n, 9 * cin)
        d = jnp.concatenate([d, self.valid_col], axis=1)               # ones/bias col
        d = jnp.pad(d, ((0, 0), (0, self.k1pad - d.shape[1]))).astype(jnp.bfloat16)

        out = _fused_forward(d, self.w1k, self.w2k, self.b2k, self.wfk, self.bfk,
                             batch=n)
        return out[:, : self.num_classes]

    def __call__(self, x_nchw):
        assert x_nchw.shape == (self.batch, self.in_ch, self.h, self.w)
        return self._forward(x_nchw)


# ----------------------------------------------------------------------------
# Pure-JAX reference (f32) for a correctness check
# ----------------------------------------------------------------------------
def _reference_forward(x, params):
    w1, b1, w2, b2, wf, bf = params
    dn = ("NCHW", "OIHW", "NCHW")
    y = lax.conv_general_dilated(x, w1, (2, 2), ((1, 1), (1, 1)), dimension_numbers=dn)
    y = jnp.maximum(y + b1[None, :, None, None], 0.0)
    y = lax.conv_general_dilated(y, w2, (2, 2), ((1, 1), (1, 1)), dimension_numbers=dn)
    y = jnp.maximum(y + b2[None, :, None, None], 0.0)
    flat = y.reshape(y.shape[0], -1)
    return flat @ wf.T + bf


if __name__ == "__main__":
    key = jax.random.PRNGKey(0)
    kx, kp = jax.random.split(key)
    x = jax.random.normal(kx, (2, 4, 16, 16), jnp.float32)   # NCHW input
    expert = ExpertPallas(kp, in_ch=4, num_classes=10, h=16, w=16, batch=2)

    out = expert(x)
    jax.block_until_ready(out)
    assert out.shape == (2, 10) and out.dtype == jnp.float32

    ref = _reference_forward(
        x, (expert.w1, expert.b1, expert.w2, expert.b2, expert.wf, expert.bf))
    err = float(jnp.max(jnp.abs(out - ref)))
    assert err < 3e-2, f"max abs err vs reference: {err}"

    print("KERNEL_OK")
</pallas_src>

<mosaic_0001>
module attributes {stable_mosaic.version = 11 : i64} {
  func.func @_fused_expert_kernel(%arg0: memref<288x64xbf16, #tpu.memory_space<vmem>>, %arg1: memref<64x16xbf16, #tpu.memory_space<vmem>>, %arg2: memref<9x16x32xbf16, #tpu.memory_space<vmem>>, %arg3: memref<1x32xf32, #tpu.memory_space<vmem>>, %arg4: memref<16x32x16xbf16, #tpu.memory_space<vmem>>, %arg5: memref<1x16xf32, #tpu.memory_space<vmem>>, %arg6: memref<2x16xf32, #tpu.memory_space<vmem>>) attributes {dimension_semantics = [], scalar_prefetch = 0 : i64, scratch_operands = 0 : i64, tpu.core_type = #tpu.core_type<tc>} {
    %c0 = arith.constant 0 : index
    %c0_0 = arith.constant 0 : index
    %0 = vector.load %arg0[%c0, %c0_0] : memref<288x64xbf16, #tpu.memory_space<vmem>>, vector<288x64xbf16>
    %c0_1 = arith.constant 0 : index
    %c0_2 = arith.constant 0 : index
    %1 = vector.load %arg1[%c0_1, %c0_2] : memref<64x16xbf16, #tpu.memory_space<vmem>>, vector<64x16xbf16>
    %cst = arith.constant dense<0.000000e+00> : vector<288x16xf32>
    %2 = tpu.matmul %0, %1, %cst {dimension_numbers = #tpu.dot_dimension_numbers<[1], [0], [0], [1], [0, 0, 1, 1], [], []>} : vector<288x64xbf16>, vector<64x16xbf16>, vector<288x16xf32> -> vector<288x16xf32>
    %cst_3 = arith.constant 0.000000e+00 : f32
    %3 = vector.broadcast %cst_3 : f32 to vector<288x16xf32>
    %4 = arith.maximumf %2, %3 : vector<288x16xf32>
    %5 = arith.truncf %4 : vector<288x16xf32> to vector<288x16xbf16>
    %cst_4 = arith.constant 0.000000e+00 : f32
    %6 = vector.broadcast %cst_4 : f32 to vector<32x32xf32>
    %7 = vector.extract_strided_slice %5 {offsets = [0, 0], sizes = [32, 16], strides = [1, 1]} : vector<288x16xbf16> to vector<32x16xbf16>
    %c0_5 = arith.constant 0 : index
    %c0_6 = arith.constant 0 : index
    %c0_7 = arith.constant 0 : index
    %8 = vector.load %arg2[%c0_5, %c0_6, %c0_7] : memref<9x16x32xbf16, #tpu.memory_space<vmem>>, vector<1x16x32xbf16>
    %9 = vector.shape_cast %8 : vector<1x16x32xbf16> to vector<16x32xbf16>
    %cst_8 = arith.constant dense<0.000000e+00> : vector<32x32xf32>
    %10 = tpu.matmul %7, %9, %cst_8 {dimension_numbers = #tpu.dot_dimension_numbers<[1], [0], [0], [1], [0, 0, 1, 1], [], []>} : vector<32x16xbf16>, vector<16x32xbf16>, vector<32x32xf32> -> vector<32x32xf32>
    %11 = arith.addf %6, %10 : vector<32x32xf32>
    %12 = vector.extract_strided_slice %5 {offsets = [32, 0], sizes = [32, 16], strides = [1, 1]} : vector<288x16xbf16> to vector<32x16xbf16>
    %c1 = arith.constant 1 : index
    %c0_9 = arith.constant 0 : index
    %c0_10 = arith.constant 0 : index
    %13 = vector.load %arg2[%c1, %c0_9, %c0_10] : memref<9x16x32xbf16, #tpu.memory_space<vmem>>, vector<1x16x32xbf16>
    %14 = vector.shape_cast %13 : vector<1x16x32xbf16> to vector<16x32xbf16>
    %cst_11 = arith.constant dense<0.000000e+00> : vector<32x32xf32>
    %15 = tpu.matmul %12, %14, %cst_11 {dimension_numbers = #tpu.dot_dimension_numbers<[1], [0], [0], [1], [0, 0, 1, 1], [], []>} : vector<32x16xbf16>, vector<16x32xbf16>, vector<32x32xf32> -> vector<32x32xf32>
    %16 = arith.addf %11, %15 : vector<32x32xf32>
    %17 = vector.extract_strided_slice %5 {offsets = [64, 0], sizes = [32, 16], strides = [1, 1]} : vector<288x16xbf16> to vector<32x16xbf16>
    %c2 = arith.constant 2 : index
    %c0_12 = arith.constant 0 : index
    %c0_13 = arith.constant 0 : index
    %18 = vector.load %arg2[%c2, %c0_12, %c0_13] : memref<9x16x32xbf16, #tpu.memory_space<vmem>>, vector<1x16x32xbf16>
    %19 = vector.shape_cast %18 : vector<1x16x32xbf16> to vector<16x32xbf16>
    %cst_14 = arith.constant dense<0.000000e+00> : vector<32x32xf32>
    %20 = tpu.matmul %17, %19, %cst_14 {dimension_numbers = #tpu.dot_dimension_numbers<[1], [0], [0], [1], [0, 0, 1, 1], [], []>} : vector<32x16xbf16>, vector<16x32xbf16>, vector<32x32xf32> -> vector<32x32xf32>
    %21 = arith.addf %16, %20 : vector<32x32xf32>
    %22 = vector.extract_strided_slice %5 {offsets = [96, 0], sizes = [32, 16], strides = [1, 1]} : vector<288x16xbf16> to vector<32x16xbf16>
    %c3 = arith.constant 3 : index
    %c0_15 = arith.constant 0 : index
    %c0_16 = arith.constant 0 : index
    %23 = vector.load %arg2[%c3, %c0_15, %c0_16] : memref<9x16x32xbf16, #tpu.memory_space<vmem>>, vector<1x16x32xbf16>
    %24 = vector.shape_cast %23 : vector<1x16x32xbf16> to vector<16x32xbf16>
    %cst_17 = arith.constant dense<0.000000e+00> : vector<32x32xf32>
    %25 = tpu.matmul %22, %24, %cst_17 {dimension_numbers = #tpu.dot_dimension_numbers<[1], [0], [0], [1], [0, 0, 1, 1], [], []>} : vector<32x16xbf16>, vector<16x32xbf16>, vector<32x32xf32> -> vector<32x32xf32>
    %26 = arith.addf %21, %25 : vector<32x32xf32>
    %27 = vector.extract_strided_slice %5 {offsets = [128, 0], sizes = [32, 16], strides = [1, 1]} : vector<288x16xbf16> to vector<32x16xbf16>
    %c4 = arith.constant 4 : index
    %c0_18 = arith.constant 0 : index
    %c0_19 = arith.constant 0 : index
    %28 = vector.load %arg2[%c4, %c0_18, %c0_19] : memref<9x16x32xbf16, #tpu.memory_space<vmem>>, vector<1x16x32xbf16>
    %29 = vector.shape_cast %28 : vector<1x16x32xbf16> to vector<16x32xbf16>
    %cst_20 = arith.constant dense<0.000000e+00> : vector<32x32xf32>
    %30 = tpu.matmul %27, %29, %cst_20 {dimension_numbers = #tpu.dot_dimension_numbers<[1], [0], [0], [1], [0, 0, 1, 1], [], []>} : vector<32x16xbf16>, vector<16x32xbf16>, vector<32x32xf32> -> vector<32x32xf32>
    %31 = arith.addf %26, %30 : vector<32x32xf32>
    %32 = vector.extract_strided_slice %5 {offsets = [160, 0], sizes = [32, 16], strides = [1, 1]} : vector<288x16xbf16> to vector<32x16xbf16>
    %c5 = arith.constant 5 : index
    %c0_21 = arith.constant 0 : index
    %c0_22 = arith.constant 0 : index
    %33 = vector.load %arg2[%c5, %c0_21, %c0_22] : memref<9x16x32xbf16, #tpu.memory_space<vmem>>, vector<1x16x32xbf16>
    %34 = vector.shape_cast %33 : vector<1x16x32xbf16> to vector<16x32xbf16>
    %cst_23 = arith.constant dense<0.000000e+00> : vector<32x32xf32>
    %35 = tpu.matmul %32, %34, %cst_23 {dimension_numbers = #tpu.dot_dimension_numbers<[1], [0], [0], [1], [0, 0, 1, 1], [], []>} : vector<32x16xbf16>, vector<16x32xbf16>, vector<32x32xf32> -> vector<32x32xf32>
    %36 = arith.addf %31, %35 : vector<32x32xf32>
    %37 = vector.extract_strided_slice %5 {offsets = [192, 0], sizes = [32, 16], strides = [1, 1]} : vector<288x16xbf16> to vector<32x16xbf16>
    %c6 = arith.constant 6 : index
    %c0_24 = arith.constant 0 : index
    %c0_25 = arith.constant 0 : index
    %38 = vector.load %arg2[%c6, %c0_24, %c0_25] : memref<9x16x32xbf16, #tpu.memory_space<vmem>>, vector<1x16x32xbf16>
    %39 = vector.shape_cast %38 : vector<1x16x32xbf16> to vector<16x32xbf16>
    %cst_26 = arith.constant dense<0.000000e+00> : vector<32x32xf32>
    %40 = tpu.matmul %37, %39, %cst_26 {dimension_numbers = #tpu.dot_dimension_numbers<[1], [0], [0], [1], [0, 0, 1, 1], [], []>} : vector<32x16xbf16>, vector<16x32xbf16>, vector<32x32xf32> -> vector<32x32xf32>
    %41 = arith.addf %36, %40 : vector<32x32xf32>
    %42 = vector.extract_strided_slice %5 {offsets = [224, 0], sizes = [32, 16], strides = [1, 1]} : vector<288x16xbf16> to vector<32x16xbf16>
    %c7 = arith.constant 7 : index
    %c0_27 = arith.constant 0 : index
    %c0_28 = arith.constant 0 : index
    %43 = vector.load %arg2[%c7, %c0_27, %c0_28] : memref<9x16x32xbf16, #tpu.memory_space<vmem>>, vector<1x16x32xbf16>
    %44 = vector.shape_cast %43 : vector<1x16x32xbf16> to vector<16x32xbf16>
    %cst_29 = arith.constant dense<0.000000e+00> : vector<32x32xf32>
    %45 = tpu.matmul %42, %44, %cst_29 {dimension_numbers = #tpu.dot_dimension_numbers<[1], [0], [0], [1], [0, 0, 1, 1], [], []>} : vector<32x16xbf16>, vector<16x32xbf16>, vector<32x32xf32> -> vector<32x32xf32>
    %46 = arith.addf %41, %45 : vector<32x32xf32>
    %47 = vector.extract_strided_slice %5 {offsets = [256, 0], sizes = [32, 16], strides = [1, 1]} : vector<288x16xbf16> to vector<32x16xbf16>
    %c8 = arith.constant 8 : index
    %c0_30 = arith.constant 0 : index
    %c0_31 = arith.constant 0 : index
    %48 = vector.load %arg2[%c8, %c0_30, %c0_31] : memref<9x16x32xbf16, #tpu.memory_space<vmem>>, vector<1x16x32xbf16>
    %49 = vector.shape_cast %48 : vector<1x16x32xbf16> to vector<16x32xbf16>
    %cst_32 = arith.constant dense<0.000000e+00> : vector<32x32xf32>
    %50 = tpu.matmul %47, %49, %cst_32 {dimension_numbers = #tpu.dot_dimension_numbers<[1], [0], [0], [1], [0, 0, 1, 1], [], []>} : vector<32x16xbf16>, vector<16x32xbf16>, vector<32x32xf32> -> vector<32x32xf32>
    %51 = arith.addf %46, %50 : vector<32x32xf32>
    %c0_33 = arith.constant 0 : index
    %c0_34 = arith.constant 0 : index
    %52 = vector.load %arg3[%c0_33, %c0_34] : memref<1x32xf32, #tpu.memory_space<vmem>>, vector<1x32xf32>
    %53 = vector.broadcast %52 : vector<1x32xf32> to vector<32x32xf32>
    %54 = arith.addf %51, %53 : vector<32x32xf32>
    %cst_35 = arith.constant 0.000000e+00 : f32
    %55 = vector.broadcast %cst_35 : f32 to vector<32x32xf32>
    %56 = arith.maximumf %54, %55 : vector<32x32xf32>
    %57 = arith.truncf %56 : vector<32x32xf32> to vector<32x32xbf16>
    %cst_36 = arith.constant 0.000000e+00 : f32
    %58 = vector.broadcast %cst_36 : f32 to vector<2x16xf32>
    %59 = vector.extract_strided_slice %57 {offsets = [0, 0], sizes = [2, 32], strides = [1, 1]} : vector<32x32xbf16> to vector<2x32xbf16>
    %c0_37 = arith.constant 0 : index
    %c0_38 = arith.constant 0 : index
    %c0_39 = arith.constant 0 : index
    %60 = vector.load %arg4[%c0_37, %c0_38, %c0_39] : memref<16x32x16xbf16, #tpu.memory_space<vmem>>, vector<1x32x16xbf16>
    %61 = vector.shape_cast %60 : vector<1x32x16xbf16> to vector<32x16xbf16>
    %cst_40 = arith.constant dense<0.000000e+00> : vector<2x16xf32>
    %62 = tpu.matmul %59, %61, %cst_40 {dimension_numbers = #tpu.dot_dimension_numbers<[1], [0], [0], [1], [0, 0, 1, 1], [], []>} : vector<2x32xbf16>, vector<32x16xbf16>, vector<2x16xf32> -> vector<2x16xf32>
    %63 = arith.addf %58, %62 : vector<2x16xf32>
    %64 = vector.extract_strided_slice %57 {offsets = [2, 0], sizes = [2, 32], strides = [1, 1]} : vector<32x32xbf16> to vector<2x32xbf16>
    %c1_41 = arith.constant 1 : index
    %c0_42 = arith.constant 0 : index
    %c0_43 = arith.constant 0 : index
    %65 = vector.load %arg4[%c1_41, %c0_42, %c0_43] : memref<16x32x16xbf16, #tpu.memory_space<vmem>>, vector<1x32x16xbf16>
    %66 = vector.shape_cast %65 : vector<1x32x16xbf16> to vector<32x16xbf16>
    %cst_44 = arith.constant dense<0.000000e+00> : vector<2x16xf32>
    %67 = tpu.matmul %64, %66, %cst_44 {dimension_numbers = #tpu.dot_dimension_numbers<[1], [0], [0], [1], [0, 0, 1, 1], [], []>} : vector<2x32xbf16>, vector<32x16xbf16>, vector<2x16xf32> -> vector<2x16xf32>
    %68 = arith.addf %63, %67 : vector<2x16xf32>
    %69 = vector.extract_strided_slice %57 {offsets = [4, 0], sizes = [2, 32], strides = [1, 1]} : vector<32x32xbf16> to vector<2x32xbf16>
    %c2_45 = arith.constant 2 : index
    %c0_46 = arith.constant 0 : index
    %c0_47 = arith.constant 0 : index
    %70 = vector.load %arg4[%c2_45, %c0_46, %c0_47] : memref<16x32x16xbf16, #tpu.memory_space<vmem>>, vector<1x32x16xbf16>
    %71 = vector.shape_cast %70 : vector<1x32x16xbf16> to vector<32x16xbf16>
    %cst_48 = arith.constant dense<0.000000e+00> : vector<2x16xf32>
    %72 = tpu.matmul %69, %71, %cst_48 {dimension_numbers = #tpu.dot_dimension_numbers<[1], [0], [0], [1], [0, 0, 1, 1], [], []>} : vector<2x32xbf16>, vector<32x16xbf16>, vector<2x16xf32> -> vector<2x16xf32>
    %73 = arith.addf %68, %72 : vector<2x16xf32>
    %74 = vector.extract_strided_slice %57 {offsets = [6, 0], sizes = [2, 32], strides = [1, 1]} : vector<32x32xbf16> to vector<2x32xbf16>
    %c3_49 = arith.constant 3 : index
    %c0_50 = arith.constant 0 : index
    %c0_51 = arith.constant 0 : index
    %75 = vector.load %arg4[%c3_49, %c0_50, %c0_51] : memref<16x32x16xbf16, #tpu.memory_space<vmem>>, vector<1x32x16xbf16>
    %76 = vector.shape_cast %75 : vector<1x32x16xbf16> to vector<32x16xbf16>
    %cst_52 = arith.constant dense<0.000000e+00> : vector<2x16xf32>
    %77 = tpu.matmul %74, %76, %cst_52 {dimension_numbers = #tpu.dot_dimension_numbers<[1], [0], [0], [1], [0, 0, 1, 1], [], []>} : vector<2x32xbf16>, vector<32x16xbf16>, vector<2x16xf32> -> vector<2x16xf32>
    %78 = arith.addf %73, %77 : vector<2x16xf32>
    %79 = vector.extract_strided_slice %57 {offsets = [8, 0], sizes = [2, 32], strides = [1, 1]} : vector<32x32xbf16> to vector<2x32xbf16>
    %c4_53 = arith.constant 4 : index
    %c0_54 = arith.constant 0 : index
    %c0_55 = arith.constant 0 : index
    %80 = vector.load %arg4[%c4_53, %c0_54, %c0_55] : memref<16x32x16xbf16, #tpu.memory_space<vmem>>, vector<1x32x16xbf16>
    %81 = vector.shape_cast %80 : vector<1x32x16xbf16> to vector<32x16xbf16>
    %cst_56 = arith.constant dense<0.000000e+00> : vector<2x16xf32>
    %82 = tpu.matmul %79, %81, %cst_56 {dimension_numbers = #tpu.dot_dimension_numbers<[1], [0], [0], [1], [0, 0, 1, 1], [], []>} : vector<2x32xbf16>, vector<32x16xbf16>, vector<2x16xf32> -> vector<2x16xf32>
    %83 = arith.addf %78, %82 : vector<2x16xf32>
    %84 = vector.extract_strided_slice %57 {offsets = [10, 0], sizes = [2, 32], strides = [1, 1]} : vector<32x32xbf16> to vector<2x32xbf16>
    %c5_57 = arith.constant 5 : index
    %c0_58 = arith.constant 0 : index
    %c0_59 = arith.constant 0 : index
    %85 = vector.load %arg4[%c5_57, %c0_58, %c0_59] : memref<16x32x16xbf16, #tpu.memory_space<vmem>>, vector<1x32x16xbf16>
    %86 = vector.shape_cast %85 : vector<1x32x16xbf16> to vector<32x16xbf16>
    %cst_60 = arith.constant dense<0.000000e+00> : vector<2x16xf32>
    %87 = tpu.matmul %84, %86, %cst_60 {dimension_numbers = #tpu.dot_dimension_numbers<[1], [0], [0], [1], [0, 0, 1, 1], [], []>} : vector<2x32xbf16>, vector<32x16xbf16>, vector<2x16xf32> -> vector<2x16xf32>
    %88 = arith.addf %83, %87 : vector<2x16xf32>
    %89 = vector.extract_strided_slice %57 {offsets = [12, 0], sizes = [2, 32], strides = [1, 1]} : vector<32x32xbf16> to vector<2x32xbf16>
    %c6_61 = arith.constant 6 : index
    %c0_62 = arith.constant 0 : index
    %c0_63 = arith.constant 0 : index
    %90 = vector.load %arg4[%c6_61, %c0_62, %c0_63] : memref<16x32x16xbf16, #tpu.memory_space<vmem>>, vector<1x32x16xbf16>
    %91 = vector.shape_cast %90 : vector<1x32x16xbf16> to vector<32x16xbf16>
    %cst_64 = arith.constant dense<0.000000e+00> : vector<2x16xf32>
    %92 = tpu.matmul %89, %91, %cst_64 {dimension_numbers = #tpu.dot_dimension_numbers<[1], [0], [0], [1], [0, 0, 1, 1], [], []>} : vector<2x32xbf16>, vector<32x16xbf16>, vector<2x16xf32> -> vector<2x16xf32>
    %93 = arith.addf %88, %92 : vector<2x16xf32>
    %94 = vector.extract_strided_slice %57 {offsets = [14, 0], sizes = [2, 32], strides = [1, 1]} : vector<32x32xbf16> to vector<2x32xbf16>
    %c7_65 = arith.constant 7 : index
    %c0_66 = arith.constant 0 : index
    %c0_67 = arith.constant 0 : index
    %95 = vector.load %arg4[%c7_65, %c0_66, %c0_67] : memref<16x32x16xbf16, #tpu.memory_space<vmem>>, vector<1x32x16xbf16>
    %96 = vector.shape_cast %95 : vector<1x32x16xbf16> to vector<32x16xbf16>
    %cst_68 = arith.constant dense<0.000000e+00> : vector<2x16xf32>
    %97 = tpu.matmul %94, %96, %cst_68 {dimension_numbers = #tpu.dot_dimension_numbers<[1], [0], [0], [1], [0, 0, 1, 1], [], []>} : vector<2x32xbf16>, vector<32x16xbf16>, vector<2x16xf32> -> vector<2x16xf32>
    %98 = arith.addf %93, %97 : vector<2x16xf32>
    %99 = vector.extract_strided_slice %57 {offsets = [16, 0], sizes = [2, 32], strides = [1, 1]} : vector<32x32xbf16> to vector<2x32xbf16>
    %c8_69 = arith.constant 8 : index
    %c0_70 = arith.constant 0 : index
    %c0_71 = arith.constant 0 : index
    %100 = vector.load %arg4[%c8_69, %c0_70, %c0_71] : memref<16x32x16xbf16, #tpu.memory_space<vmem>>, vector<1x32x16xbf16>
    %101 = vector.shape_cast %100 : vector<1x32x16xbf16> to vector<32x16xbf16>
    %cst_72 = arith.constant dense<0.000000e+00> : vector<2x16xf32>
    %102 = tpu.matmul %99, %101, %cst_72 {dimension_numbers = #tpu.dot_dimension_numbers<[1], [0], [0], [1], [0, 0, 1, 1], [], []>} : vector<2x32xbf16>, vector<32x16xbf16>, vector<2x16xf32> -> vector<2x16xf32>
    %103 = arith.addf %98, %102 : vector<2x16xf32>
    %104 = vector.extract_strided_slice %57 {offsets = [18, 0], sizes = [2, 32], strides = [1, 1]} : vector<32x32xbf16> to vector<2x32xbf16>
    %c9 = arith.constant 9 : index
    %c0_73 = arith.constant 0 : index
    %c0_74 = arith.constant 0 : index
    %105 = vector.load %arg4[%c9, %c0_73, %c0_74] : memref<16x32x16xbf16, #tpu.memory_space<vmem>>, vector<1x32x16xbf16>
    %106 = vector.shape_cast %105 : vector<1x32x16xbf16> to vector<32x16xbf16>
    %cst_75 = arith.constant dense<0.000000e+00> : vector<2x16xf32>
    %107 = tpu.matmul %104, %106, %cst_75 {dimension_numbers = #tpu.dot_dimension_numbers<[1], [0], [0], [1], [0, 0, 1, 1], [], []>} : vector<2x32xbf16>, vector<32x16xbf16>, vector<2x16xf32> -> vector<2x16xf32>
    %108 = arith.addf %103, %107 : vector<2x16xf32>
    %109 = vector.extract_strided_slice %57 {offsets = [20, 0], sizes = [2, 32], strides = [1, 1]} : vector<32x32xbf16> to vector<2x32xbf16>
    %c10 = arith.constant 10 : index
    %c0_76 = arith.constant 0 : index
    %c0_77 = arith.constant 0 : index
    %110 = vector.load %arg4[%c10, %c0_76, %c0_77] : memref<16x32x16xbf16, #tpu.memory_space<vmem>>, vector<1x32x16xbf16>
    %111 = vector.shape_cast %110 : vector<1x32x16xbf16> to vector<32x16xbf16>
    %cst_78 = arith.constant dense<0.000000e+00> : vector<2x16xf32>
    %112 = tpu.matmul %109, %111, %cst_78 {dimension_numbers = #tpu.dot_dimension_numbers<[1], [0], [0], [1], [0, 0, 1, 1], [], []>} : vector<2x32xbf16>, vector<32x16xbf16>, vector<2x16xf32> -> vector<2x16xf32>
    %113 = arith.addf %108, %112 : vector<2x16xf32>
    %114 = vector.extract_strided_slice %57 {offsets = [22, 0], sizes = [2, 32], strides = [1, 1]} : vector<32x32xbf16> to vector<2x32xbf16>
    %c11 = arith.constant 11 : index
    %c0_79 = arith.constant 0 : index
    %c0_80 = arith.constant 0 : index
    %115 = vector.load %arg4[%c11, %c0_79, %c0_80] : memref<16x32x16xbf16, #tpu.memory_space<vmem>>, vector<1x32x16xbf16>
    %116 = vector.shape_cast %115 : vector<1x32x16xbf16> to vector<32x16xbf16>
    %cst_81 = arith.constant dense<0.000000e+00> : vector<2x16xf32>
    %117 = tpu.matmul %114, %116, %cst_81 {dimension_numbers = #tpu.dot_dimension_numbers<[1], [0], [0], [1], [0, 0, 1, 1], [], []>} : vector<2x32xbf16>, vector<32x16xbf16>, vector<2x16xf32> -> vector<2x16xf32>
    %118 = arith.addf %113, %117 : vector<2x16xf32>
    %119 = vector.extract_strided_slice %57 {offsets = [24, 0], sizes = [2, 32], strides = [1, 1]} : vector<32x32xbf16> to vector<2x32xbf16>
    %c12 = arith.constant 12 : index
    %c0_82 = arith.constant 0 : index
    %c0_83 = arith.constant 0 : index
    %120 = vector.load %arg4[%c12, %c0_82, %c0_83] : memref<16x32x16xbf16, #tpu.memory_space<vmem>>, vector<1x32x16xbf16>
    %121 = vector.shape_cast %120 : vector<1x32x16xbf16> to vector<32x16xbf16>
    %cst_84 = arith.constant dense<0.000000e+00> : vector<2x16xf32>
    %122 = tpu.matmul %119, %121, %cst_84 {dimension_numbers = #tpu.dot_dimension_numbers<[1], [0], [0], [1], [0, 0, 1, 1], [], []>} : vector<2x32xbf16>, vector<32x16xbf16>, vector<2x16xf32> -> vector<2x16xf32>
    %123 = arith.addf %118, %122 : vector<2x16xf32>
    %124 = vector.extract_strided_slice %57 {offsets = [26, 0], sizes = [2, 32], strides = [1, 1]} : vector<32x32xbf16> to vector<2x32xbf16>
    %c13 = arith.constant 13 : index
    %c0_85 = arith.constant 0 : index
    %c0_86 = arith.constant 0 : index
    %125 = vector.load %arg4[%c13, %c0_85, %c0_86] : memref<16x32x16xbf16, #tpu.memory_space<vmem>>, vector<1x32x16xbf16>
    %126 = vector.shape_cast %125 : vector<1x32x16xbf16> to vector<32x16xbf16>
    %cst_87 = arith.constant dense<0.000000e+00> : vector<2x16xf32>
    %127 = tpu.matmul %124, %126, %cst_87 {dimension_numbers = #tpu.dot_dimension_numbers<[1], [0], [0], [1], [0, 0, 1, 1], [], []>} : vector<2x32xbf16>, vector<32x16xbf16>, vector<2x16xf32> -> vector<2x16xf32>
    %128 = arith.addf %123, %127 : vector<2x16xf32>
    %129 = vector.extract_strided_slice %57 {offsets = [28, 0], sizes = [2, 32], strides = [1, 1]} : vector<32x32xbf16> to vector<2x32xbf16>
    %c14 = arith.constant 14 : index
    %c0_88 = arith.constant 0 : index
    %c0_89 = arith.constant 0 : index
    %130 = vector.load %arg4[%c14, %c0_88, %c0_89] : memref<16x32x16xbf16, #tpu.memory_space<vmem>>, vector<1x32x16xbf16>
    %131 = vector.shape_cast %130 : vector<1x32x16xbf16> to vector<32x16xbf16>
    %cst_90 = arith.constant dense<0.000000e+00> : vector<2x16xf32>
    %132 = tpu.matmul %129, %131, %cst_90 {dimension_numbers = #tpu.dot_dimension_numbers<[1], [0], [0], [1], [0, 0, 1, 1], [], []>} : vector<2x32xbf16>, vector<32x16xbf16>, vector<2x16xf32> -> vector<2x16xf32>
    %133 = arith.addf %128, %132 : vector<2x16xf32>
    %134 = vector.extract_strided_slice %57 {offsets = [30, 0], sizes = [2, 32], strides = [1, 1]} : vector<32x32xbf16> to vector<2x32xbf16>
    %c15 = arith.constant 15 : index
    %c0_91 = arith.constant 0 : index
    %c0_92 = arith.constant 0 : index
    %135 = vector.load %arg4[%c15, %c0_91, %c0_92] : memref<16x32x16xbf16, #tpu.memory_space<vmem>>, vector<1x32x16xbf16>
    %136 = vector.shape_cast %135 : vector<1x32x16xbf16> to vector<32x16xbf16>
    %cst_93 = arith.constant dense<0.000000e+00> : vector<2x16xf32>
    %137 = tpu.matmul %134, %136, %cst_93 {dimension_numbers = #tpu.dot_dimension_numbers<[1], [0], [0], [1], [0, 0, 1, 1], [], []>} : vector<2x32xbf16>, vector<32x16xbf16>, vector<2x16xf32> -> vector<2x16xf32>
    %138 = arith.addf %133, %137 : vector<2x16xf32>
    %c0_94 = arith.constant 0 : index
    %c0_95 = arith.constant 0 : index
    %139 = vector.load %arg5[%c0_94, %c0_95] : memref<1x16xf32, #tpu.memory_space<vmem>>, vector<1x16xf32>
    %140 = vector.broadcast %139 : vector<1x16xf32> to vector<2x16xf32>
    %141 = arith.addf %138, %140 : vector<2x16xf32>
    %c0_96 = arith.constant 0 : index
    %c0_97 = arith.constant 0 : index
    %142 = vector.load %arg6[%c0_96, %c0_97] : memref<2x16xf32, #tpu.memory_space<vmem>>, vector<2x16xf32>
    tpu.vector_store %arg6[%c0_96, %c0_97], %141 {strides = array<i32>} : memref<2x16xf32, #tpu.memory_space<vmem>>, vector<2x16xf32>,
    return
  }
}

</mosaic_0001>

<bundles_post_ra>
// kernel: _forward_impl.1
= control target key start
LH: loop header
LB: loop body
LE: loop exit
PB: predicated region body
PF: predicated region fallthrough
CT: control target
= control target key end

     0   :  { %vm183_vm0 = vcmask 523264   ;;  %s3123_s0 = inlined_call_operand.vmem [shape: bf16[288,64], index: 0, kind: input, shape index: {}]   ;;  %s3124_s1 = inlined_call_operand.vmem [shape: bf16[64,16], index: 1, kind: input, shape index: {}]   ;;  %s3125_s2 = inlined_call_operand.vmem [shape: bf16[9,16,32], index: 2, kind: input, shape index: {}]   ;;  %s3126_s3 = inlined_call_operand.vmem [shape: f32[1,32], index: 3, kind: input, shape index: {}]   ;;  %s3127_s4 = inlined_call_operand.vmem [shape: bf16[16,32,16], index: 4, kind: input, shape index: {}]   ;;  %s3128_s5 = inlined_call_operand.vmem [shape: f32[1,16], index: 5, kind: input, shape index: {}]   ;;  %s3129_s6 = inlined_call_operand.hbm [shape: f32[2,16], index: 6, kind: output, shape index: {}]  }
   0x1   :  { %v2655_v0 = vld [vmem:[%s3124_s1] sm:$0xff]   ;;  %v2656_v1 = vld [vmem:[%s3124_s1 + $0x8] sm:$0xff]   ;;  %v2657_v2 = vld [vmem:[%s3124_s1 + $0x10] sm:$0xff]  }
   0x2   :  { %2394 = vmatprep.subr.bf16.mxu0 %v2655_v0  ;;  %v2659_v3 = vld [vmem:[%s3123_s0] sm:$0xff]   ;;  %v2658_v4 = vld [vmem:[%s3124_s1 + $0x18] sm:$0xff]   ;;  %v2660_v5 = vld [vmem:[%s3123_s0 + $0x8] sm:$0xff]  }
   0x3   :  { %2395 = vmatpush3.bf16.msra.mxu0 %v2655_v0  ;;  %2402 = vmatprep.mubr.msk.bf16.mxu0 %vm183_vm0, %v2659_v3  ;;  %v2661_v6 = vld [vmem:[%s3123_s0 + $0x10] sm:$0xff]   ;;  %v2662_v7 = vld [vmem:[%s3123_s0 + $0x18] sm:$0xff]   ;;  %v2663_v8 = vld [vmem:[%s3123_s0 + $0x20] sm:$0xff]  }
   0x4   :  { %2396 = vmatprep.subr.bf16.mxu0 %v2656_v1  ;;  %v2664_v9 = vld [vmem:[%s3123_s0 + $0x28] sm:$0xff]   ;;  %v2665_v10 = vld [vmem:[%s3123_s0 + $0x30] sm:$0xff]   ;;  %v2666_v11 = vld [vmem:[%s3123_s0 + $0x38] sm:$0xff]  }
   0x5   :  { %v2667_v12 = vld [vmem:[%s3123_s0 + $0x40] sm:$0xff]   ;;  %v2668_v13 = vld [vmem:[%s3123_s0 + $0x48] sm:$0xff]   ;;  %v2669_v14 = vld [vmem:[%s3123_s0 + $0x50] sm:$0xff]  }
   0x7   :  { %2397 = vmatpush3.bf16.msra.mxu0 %v2656_v1 }
   0x8   :  { %2398 = vmatprep.subr.bf16.mxu0 %v2657_v2 }
   0xb   :  { %2399 = vmatpush3.bf16.msra.mxu0 %v2657_v2 }
   0xc   :  { %2400 = vmatprep.subr.bf16.mxu0 %v2658_v4 }
   0xf   :  { %2401 = vmatpush3.bf16.msra.mxu0 %v2658_v4 }
  0x12   :  { %2403 = vmatmul.mubr.msk.bf16.vlgmr.msra.gmra.mrb[0].mxu0 %vm183_vm0, %v2660_v5 }
  0x13   :  { %2406 = vmatprep.mubr.msk.bf16.mxu0 %vm183_vm0, %v2661_v6 }
  0x1a   :  { %2407 = vmatmul.mubr.msk.bf16.gmra.mrb[4].mxu0 %vm183_vm0, %v2662_v7 }
  0x1b   :  { %2410 = vmatprep.mubr.msk.bf16.mxu0 %vm183_vm0, %v2663_v8 }
  0x22   :  { %2411 = vmatmul.mubr.msk.bf16.gmra.mrb[8].mxu0 %vm183_vm0, %v2664_v9 }
  0x23   :  { %2414 = vmatprep.mubr.msk.bf16.mxu0 %vm183_vm0, %v2665_v10 }
  0x2a   :  { %2415 = vmatmul.mubr.msk.bf16.gmra.mrb[12].mxu0 %vm183_vm0, %v2666_v11 }
  0x2b   :  { %2418 = vmatprep.mubr.msk.bf16.mxu0 %vm183_vm0, %v2667_v12 }
  0x2c   :  { %11 = vsyncpa [#allocation3], 0  ;;  %v2670_v15 = vld [vmem:[%s3123_s0 + $0x58] sm:$0xff]   ;;  %v2671_v16 = vld [vmem:[%s3123_s0 + $0x60] sm:$0xff]   ;;  %v2742_v25 = vmov 0.0   ;;  %vm480_vm1 = vcmask 130048  }
  0x2d   :  { %v2672_v17 = vld [vmem:[%s3123_s0 + $0x68] sm:$0xff]   ;;  %v2673_v18 = vld [vmem:[%s3123_s0 + $0x70] sm:$0xff]   ;;  %v2674_v19 = vld [vmem:[%s3123_s0 + $0x78] sm:$0xff]   ;;  %2508 = vmatprep.subr.bf16.mxu0 %v2742_v25  ;;  %vm2743_vm2 = vmmov 0   ;;  %vm1113_vm3 = vcmask 261120   ;;  %s2744_s17 = smov [#allocation2]  }
  0x2e   :  { %v2675_v20 = vld [vmem:[%s3123_s0 + $0x80] sm:$0xff]   ;;  %v2676_v21 = vld [vmem:[%s3123_s0 + $0x88] sm:$0xff]   ;;  %v2679_v47 = vld [vmem:[%s3125_s2 + $0x10] sm:$0xff]   ;;  %vm2088_vm4 = vcmask 123904  }
  0x2f   :  { %v2677_v22 = vld [vmem:[%s3125_s2 + $0x8] sm:$0xff]   ;;  %v2678_v23 = vld [vmem:[%s3125_s2] sm:$0xff]   ;;  %v2680_v63 = vld [vmem:[%s3125_s2 + $0x18] sm:$0xff]  }
  0x30   :  { %2438 = vmatprep.subr.bf16.mxu1 %v2677_v22  ;;  %v2686_v24 = vld [vmem:[%s3127_s4 + $0x20] sm:$0xff]   ;;  %v2687_v26 = vld [vmem:[%s3127_s4 + $0x28] sm:$0xff]  }
  0x31   :  { %2439 = vmatpush3.bf16.msra.mxu1 %v2677_v22  ;;  %2509 = vmatpush3.bf16.msra.mxu0 %v2686_v24 }
  0x32   :  { %2419 = vmatmul.mubr.msk.bf16.gmra.mrb[16].mxu0 %vm183_vm0, %v2668_v13  ;;  %2444 = vmatprep.subr.bf16.mxu1 %v2678_v23 }
  0x33   :  { %2422 = vmatprep.mubr.msk.bf16.mxu0 %vm183_vm0, %v2669_v14  ;;  %2510 = vmatprep.subr.bf16.mxu0 %v2742_v25 }
  0x35   :  { %2511 = vmatpush3.bf16.msra.mxu0 %v2687_v26 }
  0x36   :  { %2524 = vmatprep.subr.bf16.mxu0 %v2742_v25 }
  0x3a   :  { %2423 = vmatmul.mubr.msk.bf16.gmra.mrb[20].mxu0 %vm183_vm0, %v2670_v15  ;;  %v2681_v15 = vld [vmem:[%s3125_s2 + $0x20] sm:$0xff]  }
  0x3b   :  { %2426 = vmatprep.mubr.msk.bf16.mxu0 %vm183_vm0, %v2671_v16 }
  0x42   :  { %2427 = vmatmul.mubr.msk.bf16.gmra.mrb[24].mxu0 %vm183_vm0, %v2672_v17 }
  0x43   :  { %2430 = vmatprep.mubr.msk.bf16.mxu0 %vm183_vm0, %v2673_v18 }
  0x4a   :  { %2431 = vmatmul.mubr.msk.bf16.gmra.mrb[28].mxu0 %vm183_vm0, %v2674_v19 }
  0x4b   :  { %2434 = vmatprep.mubr.msk.bf16.mxu0 %vm183_vm0, %v2675_v20 }
  0x52   :  { %2435 = vmatmul.mubr.msk.bf16.gmra.mrb[32].mxu0 %vm183_vm0, %v2676_v21 }
  0x53   :  { %2512 = vmatprep.mubr.msk.bf16.mxu0 %vm2743_vm2, %v2742_v25 }
  0xe5   :  { %v2404_v27 = vpop.f32.mrb[0].mxu0 }
  0xe6   :  { %v272_v28 = vpop.f32.mrb[1].mxu0  ;;  %v417_v30 = vmax.f32 %v2404_v27, 0.0 }
  0xe7   :  { %v2405_v29 = vpop.f32.mrb[2].mxu0  ;;  %v415_v33 = vmax.f32 %v272_v28, 0.0 }
  0xe8   :  { %v418_v31 = vmax.f32 %v2405_v29, 0.0  ;;  %v275_v32 = vpop.f32.mrb[3].mxu0 }
  0xe9   :  { %v416_v34 = vmax.f32 %v275_v32, 0.0  ;;  %v2682_v32 = vld [vmem:[%s3125_s2 + $0x28] sm:$0xff]  }
  0xea   :  { %v452_v35 = vpack.c.bf16 %v418_v31, %v417_v30 }
  0xeb   :  { %v451_v36 = vpack.c.bf16 %v416_v34, %v415_v33 }
  0xed   :  { %v2408_v37 = vpop.f32.mrb[4].mxu0 }
  0xee   :  { %v288_v38 = vpop.f32.mrb[5].mxu0  ;;  %v421_v40 = vmax.f32 %v2408_v37, 0.0 }
  0xef   :  { %v2409_v39 = vpop.f32.mrb[6].mxu0  ;;  %v419_v43 = vmax.f32 %v288_v38, 0.0 }
  0xf0   :  { %v422_v41 = vmax.f32 %v2409_v39, 0.0  ;;  %v291_v42 = vpop.f32.mrb[7].mxu0 }
  0xf1   :  { %v420_v44 = vmax.f32 %v291_v42, 0.0 }
  0xf2   :  { %v454_v45 = vpack.c.bf16 %v422_v41, %v421_v40 }
  0xf3   :  { %v453_v46 = vpack.c.bf16 %v420_v44, %v419_v43 }
  0xf5   :  { %2440 = vmatprep.mubr.msk.bf16.mxu1 %vm480_vm1, %v453_v46  ;;  %v2412_v48 = vpop.f32.mrb[8].mxu0 }
  0xf6   :  { %2441 = vmatmul.mubr.msk.bf16.vlgmr.msra.gmra.mrb[0].mxu1 %vm480_vm1, %v454_v45  ;;  %v425_v49 = vmax.f32 %v2412_v48, 0.0  ;;  %v304_v50 = vpop.f32.mrb[9].mxu0  ;;  %v2683_v48 = vld [vmem:[%s3125_s2 + $0x30] sm:$0xff]  }
  0xf7   :  { %2445 = vmatpush3.bf16.msra.mxu1 %v2678_v23  ;;  %2446 = vmatprep.mubr.msk.bf16.mxu1 %vm480_vm1, %v451_v36  ;;  %v423_v51 = vmax.f32 %v304_v50, 0.0  ;;  %v2413_v52 = vpop.f32.mrb[10].mxu0 }
  0xf8   :  { %2450 = vmatprep.subr.bf16.mxu1 %v2679_v47  ;;  %v426_v53 = vmax.f32 %v2413_v52, 0.0  ;;  %v307_v54 = vpop.f32.mrb[11].mxu0 }
  0xf9   :  { %v424_v55 = vmax.f32 %v307_v54, 0.0 }
  0xfa   :  { %v456_v56 = vpack.c.bf16 %v426_v53, %v425_v49 }
  0xfb   :  { %v455_v57 = vpack.c.bf16 %v424_v55, %v423_v51 }
  0xfd   :  { %v2416_v58 = vpop.f32.mrb[12].mxu0 }
  0xfe   :  { %v429_v59 = vmax.f32 %v2416_v58, 0.0  ;;  %v320_v60 = vpop.f32.mrb[13].mxu0 }
  0xff   :  { %v427_v61 = vmax.f32 %v320_v60, 0.0  ;;  %v2417_v62 = vpop.f32.mrb[14].mxu0  ;;  %v2685_v60 = vld [vmem:[%s3125_s2 + $0x40] sm:$0xff]  }
 0x100   :  { %v430_v0 = vmax.f32 %v2417_v62, 0.0  ;;  %v323_v1 = vpop.f32.mrb[15].mxu0  ;;  %v2689_v62 = vld [vmem:[%s3127_s4 + $0x18] sm:$0xff]  }
 0x101   :  { %v428_v2 = vmax.f32 %v323_v1, 0.0 }
 0x102   :  { %2447 = vmatmul.mubr.msk.bf16.vlgmr.msra.gmra.mrb[0].mxu1 %vm480_vm1, %v452_v35  ;;  %v458_v3 = vpack.c.bf16 %v430_v0, %v429_v59  ;;  %v2684_v59 = vld [vmem:[%s3125_s2 + $0x38] sm:$0xff]  }
 0x103   :  { %2451 = vmatpush3.bf16.msra.mxu1 %v2679_v47  ;;  %2452 = vmatprep.mubr.msk.bf16.mxu1 %vm480_vm1, %v455_v57  ;;  %v457_v4 = vpack.c.bf16 %v428_v2, %v427_v61  ;;  %v2688_v61 = vld [vmem:[%s3127_s4 + $0x10] sm:$0xff]  }
 0x104   :  { %2456 = vmatprep.subr.bf16.mxu1 %v2680_v63 }
 0x105   :  { %v2420_v5 = vpop.f32.mrb[16].mxu0 }
 0x106   :  { %v433_v6 = vmax.f32 %v2420_v5, 0.0  ;;  %v336_v7 = vpop.f32.mrb[17].mxu0 }
 0x107   :  { %v431_v8 = vmax.f32 %v336_v7, 0.0  ;;  %v2421_v9 = vpop.f32.mrb[18].mxu0 }
 0x108   :  { %v434_v10 = vmax.f32 %v2421_v9, 0.0  ;;  %v339_v11 = vpop.f32.mrb[19].mxu0 }
 0x109   :  { %v432_v12 = vmax.f32 %v339_v11, 0.0 }
 0x10a   :  { %v460_v13 = vpack.c.bf16 %v434_v10, %v433_v6 }
 0x10b   :  { %v459_v14 = vpack.c.bf16 %v432_v12, %v431_v8 }
 0x10d   :  { %v2424_v16 = vpop.f32.mrb[20].mxu0 }
 0x10e   :  { %2453 = vmatmul.mubr.msk.bf16.vlgmr.msra.gmra.mrb[0].mxu1 %vm480_vm1, %v456_v56  ;;  %v437_v17 = vmax.f32 %v2424_v16, 0.0  ;;  %v352_v18 = vpop.f32.mrb[21].mxu0 }
 0x10f   :  { %2457 = vmatpush3.bf16.msra.mxu1 %v2680_v63  ;;  %2458 = vmatprep.mubr.msk.bf16.mxu1 %vm480_vm1, %v457_v4  ;;  %v435_v19 = vmax.f32 %v352_v18, 0.0  ;;  %v2425_v20 = vpop.f32.mrb[22].mxu0  ;;  %v2187_v63 = vld [vmem:[%s3126_s3] ss:$0 sm:$0xff]  ;;  %v2692_v18 = vld [vmem:[%s3127_s4 + $0x8] sm:$0xff]   ;;  %s2096_s3 = sshll.u32 %s2744_s17, 4  ;;  %s2097_s3 = int_to_ptr.vmem [resolvable:$true] %s2096_s3 }
 0x110   :  { %2462 = vmatprep.subr.bf16.mxu1 %v2681_v15  ;;  %v438_v21 = vmax.f32 %v2425_v20, 0.0  ;;  %v355_v22 = vpop.f32.mrb[23].mxu0  ;;  %v2694_v20 = vld [vmem:[%s3127_s4 + $0x30] sm:$0xff]   ;;  %s2718_s18 = scalar_lea.vmem %s2097_s3, 32  ;;  %p2723_p1 = scmp.lt.s32.totalorder %s2097_s3, %s2097_s3 }
 0x111   :  { %v436_v23 = vmax.f32 %v355_v22, 0.0  ;;  %p2719_p0 = scmp.ne.s32.totalorder %s2097_s3, %s2718_s18  ;;  %p2724_p2 = scmp.lt.s32.totalorder %s2718_s18, %s2718_s18 }
 0x112   :  { %v462_v24 = vpack.c.bf16 %v438_v21, %v437_v17  ;;  %v2695_v21 = vld [vmem:[%s3127_s4 + $0x60] sm:$0xff]  }
 0x113   :  { %v461_v26 = vpack.c.bf16 %v436_v23, %v435_v19  ;;  %v2693_v19 = vld [vmem:[%s3127_s4 + $0x48] sm:$0xff]   ;;  %v2696_v23 = vld [vmem:[%s3127_s4 + $0x38] sm:$0xff]   ;;  %p2725_p3 = por %p2724_p2, %p2723_p1 }
 0x115   :  { %v2428_v27 = vpop.f32.mrb[24].mxu0  ;;  %p2726_p4 = pnand %p2725_p3, %p2719_p0 }
 0x116   :  { %v441_v28 = vmax.f32 %v2428_v27, 0.0  ;;  %v368_v29 = vpop.f32.mrb[25].mxu0  ;;  %v2699_v27 = vld [vmem:[%s3127_s4 + $0x80] sm:$0xff]  }
 0x117   :  { %v439_v30 = vmax.f32 %v368_v29, 0.0  ;;  %v2429_v31 = vpop.f32.mrb[26].mxu0 }
 0x118   :  { %v442_v33 = vmax.f32 %v2429_v31, 0.0  ;;  %v371_v34 = vpop.f32.mrb[27].mxu0  ;;  %v2701_v31 = vld [vmem:[%s3127_s4 + $0x88] sm:$0xff]  }
 0x119   :  { %v440_v35 = vmax.f32 %v371_v34, 0.0 }
 0x11a   :  { %2459 = vmatmul.mubr.msk.bf16.vlgmr.msra.gmra.mrb[0].mxu1 %vm480_vm1, %v458_v3  ;;  %v464_v36 = vpack.c.bf16 %v442_v33, %v441_v28  ;;  %v2703_v33 = vld [vmem:[%s3127_s4 + $0xa0] sm:$0xff]  }
 0x11b   :  { %2463 = vmatpush3.bf16.msra.mxu1 %v2681_v15  ;;  %2464 = vmatprep.mubr.msk.bf16.mxu1 %vm480_vm1, %v459_v14  ;;  %v463_v37 = vpack.c.bf16 %v440_v35, %v439_v30  ;;  %v2690_v14 = vld [vmem:[%s3127_s4] sm:$0xff]   ;;  %v2700_v30 = vld [vmem:[%s3127_s4 + $0x58] sm:$0xff]  }
 0x11c   :  { %2468 = vmatprep.subr.bf16.mxu1 %v2682_v32  ;;  %v2691_v15 = vld [vmem:[%s3127_s4 + $0x40] sm:$0xff]   ;;  %v2704_v35 = vld [vmem:[%s3127_s4 + $0x78] sm:$0xff]  }
 0x11d   :  { %v2432_v38 = vpop.f32.mrb[28].mxu0 }
 0x11e   :  { %v445_v39 = vmax.f32 %v2432_v38, 0.0  ;;  %v384_v40 = vpop.f32.mrb[29].mxu0  ;;  %v2707_v38 = vld [vmem:[%s3127_s4 + $0xc0] sm:$0xff]  }
 0x11f   :  { %v443_v41 = vmax.f32 %v384_v40, 0.0  ;;  %v2433_v42 = vpop.f32.mrb[30].mxu0 }
 0x120   :  { %v446_v43 = vmax.f32 %v2433_v42, 0.0  ;;  %v387_v44 = vpop.f32.mrb[31].mxu0  ;;  %v2709_v42 = vld [vmem:[%s3127_s4 + $0xc8] sm:$0xff]  }
 0x121   :  { %v444_v45 = vmax.f32 %v387_v44, 0.0  ;;  %v2711_v44 = vld [vmem:[%s3127_s4 + $0xe0] sm:$0xff]  }
 0x122   :  { %v466_v46 = vpack.c.bf16 %v446_v43, %v445_v39  ;;  %v2710_v43 = vld [vmem:[%s3127_s4 + $0xb0] sm:$0xff]  }
 0x123   :  { %v465_v47 = vpack.c.bf16 %v444_v45, %v443_v41  ;;  %v2708_v41 = vld [vmem:[%s3127_s4 + $0x98] sm:$0xff]  }
 0x125   :  { %v2436_v49 = vpop.f32.mrb[32].mxu0 }
 0x126   :  { %2465 = vmatmul.mubr.msk.bf16.vlgmr.msra.gmra.mrb[0].mxu1 %vm480_vm1, %v460_v13  ;;  %v449_v50 = vmax.f32 %v2436_v49, 0.0  ;;  %v400_v51 = vpop.f32.mrb[33].mxu0  ;;  %v2714_v49 = vld [vmem:[%s3127_s4 + $0xd0] sm:$0xff]  }
 0x127   :  { %2469 = vmatpush3.bf16.msra.mxu1 %v2682_v32  ;;  %2470 = vmatprep.mubr.msk.bf16.mxu1 %vm480_vm1, %v461_v26  ;;  %v447_v52 = vmax.f32 %v400_v51, 0.0  ;;  %v2437_v53 = vpop.f32.mrb[34].mxu0  ;;  %v2698_v26 = vld [vmem:[%s3127_s4 + $0x50] sm:$0xff]  }
 0x128   :  { %2474 = vmatprep.subr.bf16.mxu1 %v2683_v48  ;;  %v450_v54 = vmax.f32 %v2437_v53, 0.0  ;;  %v403_v55 = vpop.f32.mrb[35].mxu0  ;;  %v2702_v32 = vld [vmem:[%s3127_s4 + $0x70] sm:$0xff]  }
 0x129   :  { %v448_v56 = vmax.f32 %v403_v55, 0.0  ;;  %v2716_v53 = vld [vmem:[%s3127_s4 + $0xf0] sm:$0xff]   ;;  %v2717_v55 = vld [vmem:[%s3127_s4 + $0xf8] sm:$0xff]  }
 0x12a   :  { %v468_v57 = vpack.c.bf16 %v450_v54, %v449_v50 }
 0x12b   :  { %v467_v58 = vpack.c.bf16 %v448_v56, %v447_v52  ;;  %v2715_v52 = vld [vmem:[%s3127_s4 + $0xd8] sm:$0xff]  }
 0x132   :  { %2471 = vmatmul.mubr.msk.bf16.vlgmr.msra.gmra.mrb[0].mxu1 %vm480_vm1, %v462_v24  ;;  %v2697_v24 = vld [vmem:[%s3127_s4 + $0x68] sm:$0xff]  }
 0x133   :  { %2475 = vmatpush3.bf16.msra.mxu1 %v2683_v48  ;;  %2476 = vmatprep.mubr.msk.bf16.mxu1 %vm480_vm1, %v463_v37  ;;  %v2706_v37 = vld [vmem:[%s3127_s4 + $0x90] sm:$0xff]   ;;  %v2713_v48 = vld [vmem:[%s3127_s4 + $0xe8] sm:$0xff]  }
 0x134   :  { %2480 = vmatprep.subr.bf16.mxu1 %v2684_v59 }
 0x13e   :  { %2477 = vmatmul.mubr.msk.bf16.vlgmr.msra.gmra.mrb[0].mxu1 %vm480_vm1, %v464_v36  ;;  %v2705_v36 = vld [vmem:[%s3127_s4 + $0xa8] sm:$0xff]  }
 0x13f   :  { %2481 = vmatpush3.bf16.msra.mxu1 %v2684_v59  ;;  %2482 = vmatprep.mubr.msk.bf16.mxu1 %vm480_vm1, %v465_v47  ;;  %v2712_v47 = vld [vmem:[%s3127_s4 + $0xb8] sm:$0xff]  }
 0x140   :  { %2486 = vmatprep.subr.bf16.mxu1 %v2685_v60 }
 0x14a   :  { %2483 = vmatmul.mubr.msk.bf16.vlgmr.msra.gmra.mrb[0].mxu1 %vm480_vm1, %v466_v46 }
 0x14b   :  { %2487 = vmatpush3.bf16.msra.mxu1 %v2685_v60  ;;  %2488 = vmatprep.mubr.msk.bf16.mxu1 %vm480_vm1, %v467_v58 }
 0x14c   :  { %2492 = vmatprep.subr.bf16.mxu1 %v2742_v25 }
 0x156   :  { %2489 = vmatmul.mubr.msk.bf16.vlgmr.msra.gmra.mrb[0].mxu1 %vm480_vm1, %v468_v57 }
 0x157   :  { %2493 = vmatpush3.bf16.msra.mxu1 %v2688_v61  ;;  %2496 = vmatprep.mubr.msk.bf16.mxu1 %vm2743_vm2, %v2742_v25 }
 0x158   :  { %2494 = vmatprep.subr.bf16.mxu1 %v2742_v25 }
 0x15b   :  { %2495 = vmatpush3.bf16.msra.mxu1 %v2689_v62 }
 0x15c   :  { %2500 = vmatprep.subr.bf16.mxu1 %v2742_v25 }
 0x229   :  { %v2490_v0 = vpop.f32.mrb[0].mxu1 }
 0x22a   :  { %v1082_v1 = vadd.f32 %v2490_v0, %v2187_v63  ;;  %v1054_v2 = vpop.f32.mrb[1].mxu1 }
 0x22b   :  { %v1080_v3 = vadd.f32 %v2187_v63, %v1054_v2  ;;  %v2491_v4 = vpop.f32.mrb[2].mxu1 }
 0x22c   :  { %v1083_v5 = vadd.f32 %v2491_v4, %v2187_v63  ;;  %v1057_v6 = vpop.f32.mrb[3].mxu1  ;;  %v1086_v8 = vmax.f32 %v1082_v1, 0.0 }
 0x22d   :  { %v1081_v7 = vadd.f32 %v2187_v63, %v1057_v6  ;;  %v1084_v10 = vmax.f32 %v1080_v3, 0.0 }
 0x22e   :  { %v1087_v9 = vmax.f32 %v1083_v5, 0.0 }
 0x22f   :  { %v1085_v11 = vmax.f32 %v1081_v7, 0.0 }
 0x230   :  { %v2934_v12 = vpack.c.bf16 %v1087_v9, %v1086_v8 }
 0x231   :  { %v2936_v13 = vpack.c.bf16 %v1085_v11, %v1084_v10 }
 0x232   :  { %v1713_v40 = vrot.slane %v2934_v12, 2  ;;  %v1651_v45 = vrot.slane %v2934_v12, 1  ;;  %v1837_v46 = vrot.slane %v2934_v12, 4  ;;  %v1775_v50 = vrot.slane %v2934_v12, 3 }
 0x233   :  { %v1100_v16 = vrot.slane %v2936_v13, 1  ;;  %v1217_v17 = vrot.slane %v2936_v13, 2  ;;  %v1341_v22 = vrot.slane %v2936_v13, 4  ;;  %v1279_v28 = vrot.slane %v2936_v13, 3 }
 0x234   :  { %v1465_v29 = vrot.slane %v2936_v13, 6  ;;  %v1403_v34 = vrot.slane %v2936_v13, 5  ;;  %v1527_v39 = vrot.slane %v2936_v13, 7  ;;  %v1961_v51 = vrot.slane %v2934_v12, 6 }
 0x235   :  { %2497 = vmatmul.mubr.msk.bf16.vlgmr.msra.gmra.mrb[4].mxu1 %vm1113_vm3, %v1100_v16  ;;  %2513 = vmatmul.mubr.msk.bf16.vlgmr.msra.gmra.mrb[36].mxu0 %vm1113_vm3, %v1217_v17  ;;  %v1899_v54 = vrot.slane %v2934_v12, 5  ;;  %v2023_v56 = vrot.slane %v2934_v12, 7 }
 0x236   :  { %2501 = vmatpush3.bf16.msra.mxu1 %v2690_v14  ;;  %2525 = vmatpush3.bf16.msra.mxu0 %v2691_v15 }
 0x237   :  { %2502 = vmatprep.subr.bf16.mxu1 %v2742_v25  ;;  %2526 = vmatprep.subr.bf16.mxu0 %v2742_v25 }
 0x238   :  { %2504 = vmatprep.mubr.msk.bf16.mxu1 %vm2743_vm2, %v2742_v25  ;;  %2528 = vmatprep.mubr.msk.bf16.mxu0 %vm2743_vm2, %v2742_v25 }
 0x23a   :  { %2503 = vmatpush3.bf16.msra.mxu1 %v2692_v18  ;;  %2527 = vmatpush3.bf16.msra.mxu0 %v2693_v19 }
 0x23b   :  { %2516 = vmatprep.subr.bf16.mxu1 %v2742_v25  ;;  %2540 = vmatprep.subr.bf16.mxu0 %v2742_v25 }
 0x23d   :  { %2505 = vmatmul.mubr.msk.bf16.vlgmr.msra.gmra.mrb[8].mxu1 %vm1113_vm3, %v2936_v13  ;;  %2529 = vmatmul.mubr.msk.bf16.vlgmr.msra.gmra.mrb[40].mxu0 %vm1113_vm3, %v1341_v22 }
 0x23e   :  { %2517 = vmatpush3.bf16.msra.mxu1 %v2694_v20  ;;  %2541 = vmatpush3.bf16.msra.mxu0 %v2695_v21 }
 0x23f   :  { %2518 = vmatprep.subr.bf16.mxu1 %v2742_v25  ;;  %2542 = vmatprep.subr.bf16.mxu0 %v2742_v25 }
 0x240   :  { %2520 = vmatprep.mubr.msk.bf16.mxu1 %vm2743_vm2, %v2742_v25  ;;  %2544 = vmatprep.mubr.msk.bf16.mxu0 %vm2743_vm2, %v2742_v25 }
 0x242   :  { %2519 = vmatpush3.bf16.msra.mxu1 %v2696_v23  ;;  %2543 = vmatpush3.bf16.msra.mxu0 %v2697_v24 }
 0x243   :  { %2532 = vmatprep.subr.bf16.mxu1 %v2742_v25  ;;  %2556 = vmatprep.subr.bf16.mxu0 %v2742_v25 }
 0x245   :  { %2521 = vmatmul.mubr.msk.bf16.vlgmr.msra.gmra.mrb[12].mxu1 %vm1113_vm3, %v1279_v28  ;;  %2545 = vmatmul.mubr.msk.bf16.vlgmr.msra.gmra.mrb[44].mxu0 %vm1113_vm3, %v1465_v29 }
 0x246   :  { %2533 = vmatpush3.bf16.msra.mxu1 %v2698_v26  ;;  %2557 = vmatpush3.bf16.msra.mxu0 %v2699_v27 }
 0x247   :  { %2534 = vmatprep.subr.bf16.mxu1 %v2742_v25  ;;  %2558 = vmatprep.subr.bf16.mxu0 %v2742_v25 }
 0x248   :  { %2536 = vmatprep.mubr.msk.bf16.mxu1 %vm2743_vm2, %v2742_v25  ;;  %2560 = vmatprep.mubr.msk.bf16.mxu0 %vm2743_vm2, %v2742_v25 }
 0x24a   :  { %2535 = vmatpush3.bf16.msra.mxu1 %v2700_v30  ;;  %2559 = vmatpush3.bf16.msra.mxu0 %v2701_v31 }
 0x24b   :  { %2548 = vmatprep.subr.bf16.mxu1 %v2742_v25  ;;  %2572 = vmatprep.subr.bf16.mxu0 %v2742_v25 }
 0x24d   :  { %2537 = vmatmul.mubr.msk.bf16.vlgmr.msra.gmra.mrb[16].mxu1 %vm1113_vm3, %v1403_v34  ;;  %2561 = vmatmul.mubr.msk.bf16.vlgmr.msra.gmra.mrb[48].mxu0 %vm1113_vm3, %v2934_v12 }
 0x24e   :  { %2549 = vmatpush3.bf16.msra.mxu1 %v2702_v32  ;;  %2573 = vmatpush3.bf16.msra.mxu0 %v2703_v33 }
 0x24f   :  { %2550 = vmatprep.subr.bf16.mxu1 %v2742_v25  ;;  %2574 = vmatprep.subr.bf16.mxu0 %v2742_v25 }
 0x250   :  { %2552 = vmatprep.mubr.msk.bf16.mxu1 %vm2743_vm2, %v2742_v25  ;;  %2576 = vmatprep.mubr.msk.bf16.mxu0 %vm2743_vm2, %v2742_v25 }
 0x252   :  { %2551 = vmatpush3.bf16.msra.mxu1 %v2704_v35  ;;  %2575 = vmatpush3.bf16.msra.mxu0 %v2705_v36 }
 0x253   :  { %2564 = vmatprep.subr.bf16.mxu1 %v2742_v25  ;;  %2588 = vmatprep.subr.bf16.mxu0 %v2742_v25 }
 0x255   :  { %2553 = vmatmul.mubr.msk.bf16.vlgmr.msra.gmra.mrb[20].mxu1 %vm1113_vm3, %v1527_v39  ;;  %2577 = vmatmul.mubr.msk.bf16.vlgmr.msra.gmra.mrb[52].mxu0 %vm1113_vm3, %v1713_v40 }
 0x256   :  { %2565 = vmatpush3.bf16.msra.mxu1 %v2706_v37  ;;  %2589 = vmatpush3.bf16.msra.mxu0 %v2707_v38 }
 0x257   :  { %2566 = vmatprep.subr.bf16.mxu1 %v2742_v25  ;;  %2590 = vmatprep.subr.bf16.mxu0 %v2742_v25 }
 0x258   :  { %2568 = vmatprep.mubr.msk.bf16.mxu1 %vm2743_vm2, %v2742_v25  ;;  %2592 = vmatprep.mubr.msk.bf16.mxu0 %vm2743_vm2, %v2742_v25 }
 0x25a   :  { %2567 = vmatpush3.bf16.msra.mxu1 %v2708_v41  ;;  %2591 = vmatpush3.bf16.msra.mxu0 %v2709_v42 }
 0x25b   :  { %2580 = vmatprep.subr.bf16.mxu1 %v2742_v25  ;;  %2604 = vmatprep.subr.bf16.mxu0 %v2742_v25 }
 0x25d   :  { %2569 = vmatmul.mubr.msk.bf16.vlgmr.msra.gmra.mrb[24].mxu1 %vm1113_vm3, %v1651_v45  ;;  %2593 = vmatmul.mubr.msk.bf16.vlgmr.msra.gmra.mrb[56].mxu0 %vm1113_vm3, %v1837_v46 }
 0x25e   :  { %2581 = vmatpush3.bf16.msra.mxu1 %v2710_v43  ;;  %2605 = vmatpush3.bf16.msra.mxu0 %v2711_v44 }
 0x25f   :  { %2582 = vmatprep.subr.bf16.mxu1 %v2742_v25  ;;  %2606 = vmatprep.subr.bf16.mxu0 %v2742_v25 }
 0x260   :  { %2584 = vmatprep.mubr.msk.bf16.mxu1 %vm2743_vm2, %v2742_v25  ;;  %2608 = vmatprep.mubr.msk.bf16.mxu0 %vm2743_vm2, %v2742_v25 }
 0x262   :  { %2583 = vmatpush3.bf16.msra.mxu1 %v2712_v47  ;;  %2607 = vmatpush3.bf16.msra.mxu0 %v2713_v48 }
 0x263   :  { %2596 = vmatprep.subr.bf16.mxu1 %v2742_v25 }
 0x265   :  { %2585 = vmatmul.mubr.msk.bf16.vlgmr.msra.gmra.mrb[28].mxu1 %vm1113_vm3, %v1775_v50  ;;  %2609 = vmatmul.mubr.msk.bf16.vlgmr.msra.gmra.mrb[60].mxu0 %vm1113_vm3, %v1961_v51 }
 0x266   :  { %2597 = vmatpush3.bf16.msra.mxu1 %v2714_v49  ;;  %2600 = vmatprep.mubr.msk.bf16.mxu1 %vm2743_vm2, %v2742_v25 }
 0x267   :  { %2598 = vmatprep.subr.bf16.mxu1 %v2742_v25 }
 0x26a   :  { %2599 = vmatpush3.bf16.msra.mxu1 %v2715_v52 }
 0x26b   :  { %2612 = vmatprep.subr.bf16.mxu1 %v2742_v25 }
 0x26d   :  { %2601 = vmatmul.mubr.msk.bf16.vlgmr.msra.gmra.mrb[32].mxu1 %vm1113_vm3, %v1899_v54 }
 0x26e   :  { %2613 = vmatpush3.bf16.msra.mxu1 %v2716_v53  ;;  %2616 = vmatprep.mubr.msk.bf16.mxu1 %vm2743_vm2, %v2742_v25 }
 0x26f   :  { %2614 = vmatprep.subr.bf16.mxu1 %v2742_v25 }
 0x272   :  { %2615 = vmatpush3.bf16.msra.mxu1 %v2717_v55 }
 0x275   :  { %2617 = vmatmul.mubr.msk.bf16.vlgmr.msra.gmra.mrb[36].mxu1 %vm1113_vm3, %v2023_v56 }
 0x308   :  { %v1151_v57 = vpop.f32.mrb[4].mxu1  ;;  %v1267_v58 = vpop.f32.mrb[36].mxu0 }
 0x309   :  { %v2498_v59 = vpop.f32.mrb[5].mxu1  ;;  %v2514_v60 = vpop.f32.mrb[37].mxu0 }
 0x30a   :  { %v1154_v61 = vpop.f32.mrb[6].mxu1  ;;  %v1270_v62 = vpop.f32.mrb[38].mxu0 }
 0x30b   :  { %v2499_v63 = vpop.f32.mrb[7].mxu1  ;;  %v2515_v0 = vpop.f32.mrb[39].mxu0 }
 0x310   :  { %v1206_v1 = vpop.f32.mrb[8].mxu1  ;;  %v1391_v2 = vpop.f32.mrb[40].mxu0 }
 0x311   :  { %v1207_v3 = vadd.f32 %v1206_v1, %v1151_v57  ;;  %v2506_v4 = vpop.f32.mrb[9].mxu1  ;;  %v2530_v5 = vpop.f32.mrb[41].mxu0 }
 0x312   :  { %v1209_v6 = vpop.f32.mrb[10].mxu1  ;;  %v1394_v25 = vpop.f32.mrb[42].mxu0  ;;  %v2296_v4 = vld [vmem:[%s3128_s5] ss:$0 sm:$0xff] }
 0x313   :  { %v2507_v7 = vpop.f32.mrb[11].mxu1  ;;  %v2531_v8 = vpop.f32.mrb[43].mxu0  ;;  %v1273_v9 = vadd.f32 %v1267_v58, %v1207_v3 }
 0x318   :  { %v1329_v10 = vpop.f32.mrb[12].mxu1  ;;  %v1515_v11 = vpop.f32.mrb[44].mxu0 }
 0x319   :  { %v1335_v12 = vadd.f32 %v1329_v10, %v1273_v9  ;;  %v2522_v13 = vpop.f32.mrb[13].mxu1  ;;  %v2546_v14 = vpop.f32.mrb[45].mxu0 }
 0x31a   :  { %v1332_v15 = vpop.f32.mrb[14].mxu1  ;;  %v1518_v16 = vpop.f32.mrb[46].mxu0 }
 0x31b   :  { %v2523_v17 = vpop.f32.mrb[15].mxu1  ;;  %v2547_v18 = vpop.f32.mrb[47].mxu0  ;;  %v1397_v19 = vadd.f32 %v1391_v2, %v1335_v12 }
 0x320   :  { %v1453_v20 = vpop.f32.mrb[16].mxu1  ;;  %v1638_v21 = vpop.f32.mrb[48].mxu0 }
 0x321   :  { %v1459_v22 = vadd.f32 %v1453_v20, %v1397_v19  ;;  %v2538_v23 = vpop.f32.mrb[17].mxu1  ;;  %v2562_v24 = vpop.f32.mrb[49].mxu0 }
 0x322   :  { %v1456_v26 = vpop.f32.mrb[18].mxu1  ;;  %v1641_v27 = vpop.f32.mrb[50].mxu0 }
 0x323   :  { %v2539_v28 = vpop.f32.mrb[19].mxu1  ;;  %v2563_v29 = vpop.f32.mrb[51].mxu0  ;;  %v1521_v30 = vadd.f32 %v1515_v11, %v1459_v22 }
 0x328   :  { %v1577_v31 = vpop.f32.mrb[20].mxu1  ;;  %v1763_v32 = vpop.f32.mrb[52].mxu0 }
 0x329   :  { %v1583_v33 = vadd.f32 %v1577_v31, %v1521_v30  ;;  %v2554_v34 = vpop.f32.mrb[21].mxu1  ;;  %v2578_v35 = vpop.f32.mrb[53].mxu0 }
 0x32a   :  { %v1580_v36 = vpop.f32.mrb[22].mxu1  ;;  %v1766_v37 = vpop.f32.mrb[54].mxu0 }
 0x32b   :  { %v2555_v38 = vpop.f32.mrb[23].mxu1  ;;  %v2579_v39 = vpop.f32.mrb[55].mxu0  ;;  %v1644_v40 = vadd.f32 %v1638_v21, %v1583_v33 }
 0x330   :  { %v1701_v41 = vpop.f32.mrb[24].mxu1  ;;  %v1887_v42 = vpop.f32.mrb[56].mxu0 }
 0x331   :  { %v1707_v43 = vadd.f32 %v1701_v41, %v1644_v40  ;;  %v2570_v44 = vpop.f32.mrb[25].mxu1  ;;  %v2594_v45 = vpop.f32.mrb[57].mxu0 }
 0x332   :  { %v1704_v46 = vpop.f32.mrb[26].mxu1  ;;  %v1890_v47 = vpop.f32.mrb[58].mxu0 }
 0x333   :  { %v2571_v48 = vpop.f32.mrb[27].mxu1  ;;  %v2595_v49 = vpop.f32.mrb[59].mxu0  ;;  %v1769_v50 = vadd.f32 %v1763_v32, %v1707_v43 }
 0x338   :  { %v1825_v51 = vpop.f32.mrb[28].mxu1  ;;  %v2011_v52 = vpop.f32.mrb[60].mxu0 }
 0x339   :  { %v1831_v53 = vadd.f32 %v1825_v51, %v1769_v50  ;;  %v2586_v54 = vpop.f32.mrb[29].mxu1  ;;  %v2610_v55 = vpop.f32.mrb[61].mxu0 }
 0x33a   :  { %v1828_v56 = vpop.f32.mrb[30].mxu1  ;;  %v2014_v57 = vpop.f32.mrb[62].mxu0 }
 0x33b   :  { %v2587_v58 = vpop.f32.mrb[31].mxu1  ;;  %v2611_v59 = vpop.f32.mrb[63].mxu0  ;;  %v1893_v60 = vadd.f32 %v1887_v42, %v1831_v53 }
 0x340   :  { %v1949_v61 = vpop.f32.mrb[32].mxu1 }
 0x341   :  { %v1955_v62 = vadd.f32 %v1949_v61, %v1893_v60  ;;  %v2602_v63 = vpop.f32.mrb[33].mxu1 }
 0x342   :  { %v1952_v0 = vpop.f32.mrb[34].mxu1 }
 0x343   :  { %v2603_v1 = vpop.f32.mrb[35].mxu1  ;;  %v2017_v2 = vadd.f32 %v2011_v52, %v1955_v62 }
 0x348   :  { %v2073_v3 = vpop.f32.mrb[36].mxu1 }
 0x349   :  { %v2079_v5 = vadd.f32 %v2073_v3, %v2017_v2  ;;  %v2618_v6 = vpop.f32.mrb[37].mxu1 }
 0x34a   :  { %v2076_v25 = vpop.f32.mrb[38].mxu1 }
 0x34b   :  { %v2087_v7 = vadd.f32 %v2296_v4, %v2079_v5  ;;  %v2619_v8 = vpop.f32.mrb[39].mxu1 }
 0x34d   :  { %2089 = vst.msk [vmem:[#allocation2] sm:$0x3] %vm2088_vm4, %v2087_v7 }
 0x34e   :  { %2729 = shalt.err (!%p2726_p4)
}
 0x34f   :  { %s2730_s5 = scalar_lea.hbm %s3129_s6, 32 }
 0x350   :  { %p2731_p5 = scmp.ne.s32.totalorder %s3129_s6, %s2730_s5  ;;  %p2734_p6 = scmp.lt.u32.totalorder %s2730_s5, %s3129_s6 }
 0x352   :  { %p2736_p7 = pnand %p2734_p6, %p2731_p5 }
 0x354   :  { %2739 = shalt.err (!%p2736_p7)
}
 0x355   :  { %2099 = dma.vmem_to_hbm [thread:$0]  %s2097_s3, 32, %s3129_s6, [#allocation3]  }
 0x356   :  { %2740 = dma.done.wait [#allocation3], 32  }
 0x357   :  { %2741 = vsyncadd [#allocation3], 4294967264 }
 0x358   :  { %2103 = vsyncpa [#allocation3], 1 }

</bundles_post_ra>
